<compile_context>
chip_gen: v7x
topology: tpu7x:2x2x1
jax: 0.10.0
libtpu: 0.0.40
codegen_flags: <defaults>
</compile_context>

<pallas_src>
import jax
import jax.numpy as jnp
from jax.experimental import pallas as pl
from jax.experimental.pallas import tpu as pltpu

HIDDEN = 768            # transformer hidden size (AutoModel base models)
OUT_UNIT_1 = 32         # out_unit_1
VOCAB = 100
SEQ = 8
BATCH = 2

NO_GRID_MAX_BATCH = 256   # <= this: single-shot, no grid machinery
MIN_BATCH_TILE = 256      # fills v6e/v7x 256-wide MXU, amortizes step overhead
MAX_BATCH_TILE = 512


def _round_up(n, m):
    return -(-n // m) * m


# ----------------------------- Pallas kernel ------------------------------ #
def fused_head_kernel(cls_ref, s_ref, projw_ref, wfold_ref, scal_ref, o_ref):
    # Synthetic-encoder projection, fused in: cls = tanh(cls_raw @ proj_w).
    # bf16 MXU inputs, f32 accumulation; tanh on the EUP in f32.
    cls = jnp.tanh(jnp.dot(cls_ref[...], projw_ref[...],
                           preferred_element_type=jnp.float32))      # [TB, 768] f32

    # Folded dense_layer_1 -> dropout(identity) -> dense_layer_2:
    #   z = (cat(cls, s) @ W1 + b1) @ w2^T + b2
    #     = sum(cls * w_fold, -1) + s * s_fold + b_fold
    # Lane-dense VPU multiply + XLU lane reduce; scalars live in SMEM.
    z = (jnp.sum(cls * wfold_ref[...], axis=-1, keepdims=True)
         + s_ref[...] * scal_ref[0, 0]
         + scal_ref[0, 1])                                           # [TB, 1] f32

    # drop_out: identity in eval mode; act_function = Sigmoid.
    o_ref[...] = jax.nn.sigmoid(z).astype(o_ref.dtype)


# ----------------------- one-time parameter preparation -------------------- #
def prepare_params(proj_w, w1x, w1s, b1, w2_row, b2):
    """Hoisted weight prep: bf16 MXU weight + folded dense1/dense2 params.

    Fold is valid because dropout is identity in eval mode (no nonlinearity
    between dense_layer_1 and dense_layer_2)."""
    proj_w_bf16 = proj_w.astype(jnp.bfloat16)                 # [768, 768] bf16
    w_fold = (w1x @ w2_row.T).T                               # [1, 768] f32 (lane dense)
    s_fold = w1s @ w2_row.T                                    # [1, 1]
    b_fold = b1 @ w2_row.T + b2                                # [1, 1]
    scal = jnp.concatenate([s_fold, b_fold], axis=1)           # [1, 2]  (SMEM)
    return proj_w_bf16, w_fold, scal


# ------------------------------ forward wrapper ---------------------------- #
def fused_forward(cls_raw, stance, proj_w_bf16, w_fold, scal):
    """tanh(cls_raw @ proj_w) -> folded classifier head, one Pallas kernel."""
    B = cls_raw.shape[0]

    if B <= NO_GRID_MAX_BATCH:
        b_pad = max(8, _round_up(B, 8))        # fill f32 sublanes
        grid = None
        tile_b = b_pad
    else:
        # >= 2 tiles (feeds both v7x TCs), 256-512 rows (fills v6e/v7x MXU,
        # amortizes ~0.35us/step grid overhead; also fine on v5e).
        tile_b = min(MAX_BATCH_TILE,
                     max(MIN_BATCH_TILE, _round_up(-(-B // 2), 128)))
        b_pad = _round_up(B, tile_b)
        grid = (b_pad // tile_b,)

    pad = b_pad - B
    if pad:
        cls_raw = jnp.pad(cls_raw, ((0, pad), (0, 0)))
        stance = jnp.pad(stance, ((0, pad), (0, 0)))

    # Activation cast only (tiny, per-call); weights are already bf16/f32.
    cls_raw = cls_raw.astype(jnp.bfloat16)

    vmem = pltpu.MemorySpace.VMEM
    smem = pltpu.MemorySpace.SMEM
    out_shape = jax.ShapeDtypeStruct((b_pad, 1), jnp.float32)

    if grid is None:
        # Single invocation: no grid machinery, one DMA per operand.
        call = pl.pallas_call(
            fused_head_kernel,
            out_shape=out_shape,
            in_specs=[
                pl.BlockSpec(memory_space=vmem),   # cls_raw   [b_pad, 768] bf16
                pl.BlockSpec(memory_space=vmem),   # stance    [b_pad, 1]   f32
                pl.BlockSpec(memory_space=vmem),   # proj_w    [768, 768]   bf16
                pl.BlockSpec(memory_space=vmem),   # w_fold    [1, 768]     f32
                pl.BlockSpec(memory_space=smem),   # (s_fold, b_fold) scalars
            ],
            out_specs=pl.BlockSpec(memory_space=vmem),
        )
    else:
        # Batch-tiled grid; constant blocks stay at block index 0 (VMEM
        # resident across iterations). "parallel" lets v7x split tiles
        # across its two TensorCores.
        call = pl.pallas_call(
            fused_head_kernel,
            out_shape=out_shape,
            grid=grid,
            in_specs=[
                pl.BlockSpec((tile_b, HIDDEN), lambda i: (i, 0)),    # cls_raw
                pl.BlockSpec((tile_b, 1), lambda i: (i, 0)),         # stance
                pl.BlockSpec((HIDDEN, HIDDEN), lambda i: (0, 0)),    # proj_w
                pl.BlockSpec((1, HIDDEN), lambda i: (0, 0)),         # w_fold
                pl.BlockSpec(memory_space=smem),                     # scalars
            ],
            out_specs=pl.BlockSpec((tile_b, 1), lambda i: (i, 0)),
            compiler_params=pltpu.CompilerParams(
                dimension_semantics=("parallel",)),
        )

    out = call(cls_raw, stance, proj_w_bf16, w_fold, scal)
    return out[:B]


# --------------------------- synthetic encoder glue ------------------------ #
def encoder_cls_embedding(ids, mask, emb_table):
    """CLS-token embedding gather (stand-in for the transformer token path);
    the 768x768 projection + tanh runs fused inside the Pallas kernel."""
    cls = emb_table[ids[:, 0]]                                  # [B, HIDDEN]
    return cls * mask[:, 0:1].astype(cls.dtype)                 # == hidden[:, 0]


# ------------------------------- references -------------------------------- #
def reference_matched(cls_raw, stance, proj_w, w1x, w1s, b1, w2_row, b2):
    """Same dtype / fold flow as the kernel (bf16 MXU inputs, f32 accumulate)."""
    cls = jnp.tanh(jnp.dot(cls_raw.astype(jnp.bfloat16),
                           proj_w.astype(jnp.bfloat16),
                           preferred_element_type=jnp.float32))
    w_fold = (w1x @ w2_row.T).T
    s_fold = (w1s @ w2_row.T)[0, 0]
    b_fold = (b1 @ w2_row.T + b2)[0, 0]
    z = jnp.sum(cls * w_fold, axis=-1, keepdims=True) + stance * s_fold + b_fold
    return jax.nn.sigmoid(z)


def reference_f32(cls_raw, stance, proj_w, w1x, w1s, b1, w2_row, b2):
    """PyTorch-faithful f32 path: concat + dense1 + dense2 + sigmoid."""
    x = jnp.tanh(cls_raw @ proj_w)
    concat = jnp.concatenate([x, stance], axis=1)               # [B, 769]
    w1 = jnp.concatenate([w1x, w1s], axis=0)                    # [769, H]
    h = concat @ w1 + b1
    z = h @ w2_row.T + b2
    return jax.nn.sigmoid(z)


if __name__ == "__main__":
    key = jax.random.PRNGKey(0)
    (k_ids, k_stance, k_emb, k_proj, k_w1, k_b1, k_w2, k_b2,
     k_ids2, k_stance2) = jax.random.split(key, 10)

    H = OUT_UNIT_1

    # synthetic transformer parameters (deterministic)
    emb_table = jax.random.normal(k_emb, (VOCAB, HIDDEN), dtype=jnp.float32) * 0.02
    proj_w = jax.random.normal(k_proj, (HIDDEN, HIDDEN), dtype=jnp.float32) * 0.02

    # classifier-head parameters (PyTorch Linear weights stored transposed for
    # x @ W; W1 [769,H] split into W1x (x part) and W1s (stance part)).
    w1_full = jax.random.normal(k_w1, (HIDDEN + 1, H), dtype=jnp.float32) * 0.05
    w1x, w1s = w1_full[:HIDDEN], w1_full[HIDDEN:]               # [768,H], [1,H]
    b1 = jax.random.normal(k_b1, (1, H), dtype=jnp.float32) * 0.05
    w2_row = jax.random.normal(k_w2, (1, H), dtype=jnp.float32) * 0.05
    b2 = jax.random.normal(k_b2, (1, 1), dtype=jnp.float32) * 0.05

    # one-time weight preparation (hoisted out of the per-call path)
    proj_w_bf16, w_fold, scal = prepare_params(proj_w, w1x, w1s, b1, w2_row, b2)
    proj_w_bf16, w_fold, scal = jax.block_until_ready((proj_w_bf16, w_fold, scal))

    def run_case(kids, kst, batch):
        ids = jax.random.randint(kids, (batch, SEQ), 0, VOCAB, dtype=jnp.int32)
        mask = jnp.ones((batch, SEQ), dtype=jnp.int32)
        stance = jax.random.uniform(kst, (batch,), dtype=jnp.float32)
        stance_col = jnp.reshape(stance, (batch, 1))   # reshape(stance, (len(stance), 1))

        cls_raw = encoder_cls_embedding(ids, mask, emb_table)   # [B, 768]
        out = fused_forward(cls_raw, stance_col, proj_w_bf16, w_fold, scal)
        out = jax.block_until_ready(out)

        ref = reference_matched(cls_raw, stance_col, proj_w, w1x, w1s, b1, w2_row, b2)
        ref32 = reference_f32(cls_raw, stance_col, proj_w, w1x, w1s, b1, w2_row, b2)
        assert out.shape == (batch, 1), out.shape
        assert jnp.allclose(out, ref, atol=1e-3, rtol=1e-3), (out, ref)
        assert jnp.allclose(out, ref32, atol=5e-3, rtol=0.0), (out, ref32)
        return out

    # small batch (module's nominal shapes): grid-free, fully VMEM-resident path
    run_case(k_ids, k_stance, BATCH)

    # larger batch: exercises the batch-tiled "parallel" grid path
    # (B=600 -> tile 384, grid of 2 tiles, padded to 768 rows)
    run_case(k_ids2, k_stance2, 600)

    print("KERNEL_OK")
</pallas_src>

<mosaic_0001>
module attributes {stable_mosaic.version = 11 : i64} {
  func.func @fused_head_kernel(%arg0: memref<8x768xbf16, #tpu.memory_space<vmem>>, %arg1: memref<8x1xf32, #tpu.memory_space<vmem>>, %arg2: memref<768x768xbf16, #tpu.memory_space<vmem>>, %arg3: memref<1x768xf32, #tpu.memory_space<vmem>>, %arg4: memref<1x2xf32, #tpu.memory_space<smem>>, %arg5: memref<8x1xf32, #tpu.memory_space<vmem>>) attributes {dimension_semantics = [], scalar_prefetch = 0 : i64, scratch_operands = 0 : i64, tpu.core_type = #tpu.core_type<tc>} {
    %c0 = arith.constant 0 : index
    %c0_0 = arith.constant 0 : index
    %0 = vector.load %arg0[%c0, %c0_0] : memref<8x768xbf16, #tpu.memory_space<vmem>>, vector<8x768xbf16>
    %c0_1 = arith.constant 0 : index
    %c0_2 = arith.constant 0 : index
    %1 = vector.load %arg2[%c0_1, %c0_2] : memref<768x768xbf16, #tpu.memory_space<vmem>>, vector<768x768xbf16>
    %cst = arith.constant dense<0.000000e+00> : vector<8x768xf32>
    %2 = tpu.matmul %0, %1, %cst {dimension_numbers = #tpu.dot_dimension_numbers<[1], [0], [0], [1], [0, 0, 1, 1], [], []>} : vector<8x768xbf16>, vector<768x768xbf16>, vector<8x768xf32> -> vector<8x768xf32>
    %3 = math.tanh %2 : vector<8x768xf32>
    %c0_3 = arith.constant 0 : index
    %c0_4 = arith.constant 0 : index
    %4 = vector.load %arg3[%c0_3, %c0_4] : memref<1x768xf32, #tpu.memory_space<vmem>>, vector<1x768xf32>
    %5 = vector.broadcast %4 : vector<1x768xf32> to vector<8x768xf32>
    %6 = arith.mulf %3, %5 : vector<8x768xf32>
    %cst_5 = arith.constant dense<0.000000e+00> : vector<8xf32>
    %7 = vector.multi_reduction <add>, %6, %cst_5 [1] : vector<8x768xf32> to vector<8xf32>
    %8 = vector.shape_cast %7 : vector<8xf32> to vector<8x1xf32>
    %c0_6 = arith.constant 0 : index
    %c0_7 = arith.constant 0 : index
    %9 = vector.load %arg1[%c0_6, %c0_7] : memref<8x1xf32, #tpu.memory_space<vmem>>, vector<8x1xf32>
    %c0_8 = arith.constant 0 : index
    %c0_9 = arith.constant 0 : index
    %10 = memref.load %arg4[%c0_8, %c0_9] : memref<1x2xf32, #tpu.memory_space<smem>>
    %11 = vector.broadcast %10 : f32 to vector<8x1xf32>
    %12 = arith.mulf %9, %11 : vector<8x1xf32>
    %13 = arith.addf %8, %12 : vector<8x1xf32>
    %c0_10 = arith.constant 0 : index
    %c1 = arith.constant 1 : index
    %14 = memref.load %arg4[%c0_10, %c1] : memref<1x2xf32, #tpu.memory_space<smem>>
    %15 = vector.broadcast %14 : f32 to vector<8x1xf32>
    %16 = arith.addf %13, %15 : vector<8x1xf32>
    %17 = arith.negf %16 : vector<8x1xf32>
    %18 = math.exp %17 : vector<8x1xf32>
    %cst_11 = arith.constant 1.000000e+00 : f32
    %19 = vector.broadcast %cst_11 : f32 to vector<8x1xf32>
    %20 = arith.addf %19, %18 : vector<8x1xf32>
    %21 = arith.divf %19, %20 : vector<8x1xf32>
    %c0_12 = arith.constant 0 : index
    %c0_13 = arith.constant 0 : index
    %22 = vector.load %arg5[%c0_12, %c0_13] : memref<8x1xf32, #tpu.memory_space<vmem>>, vector<8x1xf32>
    tpu.vector_store %arg5[%c0_12, %c0_13], %21 {strides = array<i32>} : memref<8x1xf32, #tpu.memory_space<vmem>>, vector<8x1xf32>,
    return
  }
}

</mosaic_0001>

<bundles_post_ra>
// kernel: tpu_custom_call.1
= control target key start
LH: loop header
LB: loop body
LE: loop exit
PB: predicated region body
PF: predicated region fallthrough
CT: control target
= control target key end

     0   :  { %10 = vsyncpa [#allocation3], 0  ;;  %s3249_s0 = inlined_call_operand.hbm [shape: bf16[8,768], index: 0, kind: input, shape index: {}]   ;;  %s3250_s1 = inlined_call_operand.vmem [shape: f32[8,1], index: 1, kind: input, shape index: {}]   ;;  %s3251_s2 = inlined_call_operand.hbm [shape: bf16[768,768], index: 2, kind: input, shape index: {}]   ;;  %s3252_s3 = inlined_call_operand.hbm [shape: f32[1,768], index: 3, kind: input, shape index: {}]   ;;  %s3253_s4 = inlined_call_operand.hbm [shape: f32[1,2], index: 4, kind: input, shape index: {}]   ;;  %s3254_s5 = inlined_call_operand.vmem [shape: f32[8,1], index: 5, kind: output, shape index: {}]  }
   0x1   :  { %11 = vsyncpa [#allocation6], 0 }
   0x2   :  { %12 = vsyncpa [#allocation4], 0  ;;  %s3123_s18 = smov [#allocation5]   ;;  %s3041_s22 = scalar_lea.hbm %s3251_s2, 36864 }
   0x3   :  { %s30_s19 = sshll.u32 %s3123_s18, 4  ;;  %p3042_p0 = scmp.ne.s32.totalorder %s3251_s2, %s3041_s22  ;;  %s31_s19 = int_to_ptr.vmem [resolvable:$true] %s30_s19 }
   0x4   :  { %p3045_p1 = scmp.lt.u32.totalorder %s3041_s22, %s3251_s2 }
   0x6   :  { %p3047_p2 = pnand %p3045_p1, %p3042_p0 }
   0x8   :  { %3050 = shalt.err (!%p3047_p2)
}
   0x9   :  { %s3051_s27 = scalar_lea.vmem %s31_s19, 36864  ;;  %p3056_p4 = scmp.lt.s32.totalorder %s31_s19, %s31_s19 }
   0xa   :  { %p3052_p3 = scmp.ne.s32.totalorder %s31_s19, %s3051_s27  ;;  %p3057_p5 = scmp.lt.s32.totalorder %s3051_s27, %s3051_s27 }
   0xc   :  { %p3058_p6 = por %p3057_p5, %p3056_p4 }
   0xe   :  { %p3059_p7 = pnand %p3058_p6, %p3052_p3 }
  0x10   :  { %3062 = shalt.err (!%p3059_p7)
}
  0x11   :  { %s3124_s28 = smov 384   ;;  %s3125_s29 = smov 24  }
  0x12   :  { %36 = dma.hbm_to_vmem [thread:$0]  %s3251_s2, 36864, %s31_s19, [#allocation6], %s3124_s28, %s3124_s28, %s3125_s29  }
  0x13   :  { %s3126_s7 = smov [#allocation2]   ;;  %s3127_s9 = smov [#allocation7]  }
  0x14   :  { %s19_s8 = sshll.u32 %s3126_s7, 4  ;;  %s43_s10 = sshll.u32 %s3127_s9, 4  ;;  %s20_s8 = int_to_ptr.vmem [resolvable:$true] %s19_s8  ;;  %s44_s10 = int_to_ptr.vmem [resolvable:$true] %s43_s10 }
  0x15   :  { %s3063_s13 = scalar_lea.hbm %s3249_s0, 384 }
  0x16   :  { %p3064_p8 = scmp.ne.s32.totalorder %s3249_s0, %s3063_s13  ;;  %p3067_p9 = scmp.lt.u32.totalorder %s3063_s13, %s3249_s0 }
  0x18   :  { %p3069_p10 = pnand %p3067_p9, %p3064_p8 }
  0x1a   :  { %3072 = shalt.err (!%p3069_p10)
}
  0x1b   :  { %s3073_s2 = scalar_lea.vmem %s20_s8, 384  ;;  %p3078_p12 = scmp.lt.s32.totalorder %s20_s8, %s20_s8 }
  0x1c   :  { %p3074_p11 = scmp.ne.s32.totalorder %s20_s8, %s3073_s2  ;;  %p3079_p13 = scmp.lt.s32.totalorder %s3073_s2, %s3073_s2 }
  0x1e   :  { %p3080_p0 = por %p3079_p13, %p3078_p12 }
  0x20   :  { %p3081_p1 = pnand %p3080_p0, %p3074_p11 }
  0x22   :  { %3084 = shalt.err (!%p3081_p1)
}
  0x23   :  { %22 = dma.hbm_to_vmem [thread:$0]  %s3249_s0, 384, %s20_s8, [#allocation3]  }
  0x24   :  { %s3085_s22 = scalar_lea.hbm %s3252_s3, 96 }
  0x25   :  { %p3086_p2 = scmp.ne.s32.totalorder %s3252_s3, %s3085_s22  ;;  %p3089_p3 = scmp.lt.u32.totalorder %s3085_s22, %s3252_s3 }
  0x27   :  { %p3091_p4 = pnand %p3089_p3, %p3086_p2 }
  0x29   :  { %3094 = shalt.err (!%p3091_p4)
}
  0x2a   :  { %s3095_s27 = scalar_lea.vmem %s44_s10, 96  ;;  %p3100_p6 = scmp.lt.s32.totalorder %s44_s10, %s44_s10 }
  0x2b   :  { %p3096_p5 = scmp.ne.s32.totalorder %s44_s10, %s3095_s27  ;;  %p3101_p7 = scmp.lt.s32.totalorder %s3095_s27, %s3095_s27 }
  0x2d   :  { %p3102_p8 = por %p3101_p7, %p3100_p6 }
  0x2f   :  { %p3103_p9 = pnand %p3102_p8, %p3096_p5 }
  0x31   :  { %3106 = shalt.err (!%p3103_p9)
}
  0x32   :  { %46 = dma.hbm_to_vmem [thread:$0]  %s3252_s3, 96, %s44_s10, [#allocation6]  }
  0x33   :  { %s3107_s6 = scalar_lea.hbm %s3253_s4, 16 }
  0x34   :  { %p3108_p10 = scmp.ne.s32.totalorder %s3253_s4, %s3107_s6  ;;  %p3111_p11 = scmp.lt.u32.totalorder %s3107_s6, %s3253_s4 }
  0x36   :  { %p3113_p12 = pnand %p3111_p11, %p3108_p10 }
  0x38   :  { %3116 = shalt.err (!%p3113_p12)
}
  0x39   :  { %s3128_s12 = smov [#allocation8]  }
  0x3a   :  { %54 = dma.hbm_to_smem %s3253_s4, 16, %s3128_s12, [#allocation4]  }
  0x3b   :  { %3117 = dma.done.wait [#allocation3], 384  }
  0x3c   :  { %3118 = vsyncadd [#allocation3], 4294966912 }
  0x3d   :  { %3119 = dma.done.wait [#allocation6], 36960  }
  0x3e   :  { %3120 = vsyncadd [#allocation6], 4294930336 }
  0x3f   :  { %3121 = dma.done.wait [#allocation4], 16  }
  0x40   :  { %3122 = vsyncadd [#allocation4], 4294967280 }
  0x41   :  { %67 = sfence }
  0x42   :  { %v2587_v0 = vld [vmem:[#allocation5 + $0x4] ss:$24 sps:$4 sm:$0xff]   ;;  %v2591_v2 = vld [vmem:[#allocation5] ss:$24 sps:$4 sm:$0xff]   ;;  %v2593_v4 = vld [vmem:[#allocation5 + $0x34] ss:$24 sps:$4 sm:$0xff]  }
  0x43   :  { %v2589_v1 = vld [vmem:[#allocation5 + $0x304] ss:$24 sps:$4 sm:$0xff]   ;;  %1820 = vmatprep.subr.bf16.mxu1 %v2587_v0  ;;  %v2592_v3 = vld [vmem:[#allocation5 + $0x300] ss:$24 sps:$4 sm:$0xff]   ;;  %v2595_v5 = vld [vmem:[#allocation5 + $0x334] ss:$24 sps:$4 sm:$0xff]  }
  0x44   :  { %1861 = vmatprep.subr.bf16.mxu0 %v2589_v1  ;;  %1821 = vmatpush1.bf16.msra.mxu1 %v2591_v2  ;;  %v2597_v6 = vld [vmem:[#allocation5 + $0x30] ss:$24 sps:$4 sm:$0xff]   ;;  %v2599_v8 = vld [vmem:[#allocation5 + $0x64] ss:$24 sps:$4 sm:$0xff]   ;;  %v2603_v10 = vld [vmem:[#allocation5 + $0x60] ss:$24 sps:$4 sm:$0xff]  }
  0x45   :  { %1862 = vmatpush1.bf16.msra.mxu0 %v2592_v3  ;;  %1822 = vmatprep.subr.bf16.mxu1 %v2593_v4  ;;  %v2598_v7 = vld [vmem:[#allocation5 + $0x330] ss:$24 sps:$4 sm:$0xff]   ;;  %v2601_v9 = vld [vmem:[#allocation5 + $0x364] ss:$24 sps:$4 sm:$0xff]   ;;  %v2604_v11 = vld [vmem:[#allocation5 + $0x360] ss:$24 sps:$4 sm:$0xff]  }
  0x46   :  { %1863 = vmatprep.subr.bf16.mxu0 %v2595_v5  ;;  %v2605_v12 = vld [vmem:[#allocation5 + $0x94] ss:$24 sps:$4 sm:$0xff]   ;;  %v2609_v14 = vld [vmem:[#allocation5 + $0x90] ss:$24 sps:$4 sm:$0xff]   ;;  %v2611_v16 = vld [vmem:[#allocation5 + $0xc4] ss:$24 sps:$4 sm:$0xff]  }
  0x47   :  { %v2607_v13 = vld [vmem:[#allocation5 + $0x394] ss:$24 sps:$4 sm:$0xff]   ;;  %v2610_v15 = vld [vmem:[#allocation5 + $0x390] ss:$24 sps:$4 sm:$0xff]   ;;  %v2613_v17 = vld [vmem:[#allocation5 + $0x3c4] ss:$24 sps:$4 sm:$0xff]  }
  0x48   :  { %1823 = vmatpush1.bf16.msra.mxu1 %v2597_v6  ;;  %v2615_v18 = vld [vmem:[#allocation5 + $0xc0] ss:$24 sps:$4 sm:$0xff]   ;;  %v2617_v20 = vld [vmem:[#allocation5 + $0xf4] ss:$24 sps:$4 sm:$0xff]   ;;  %v2621_v22 = vld [vmem:[#allocation5 + $0xf0] ss:$24 sps:$4 sm:$0xff]  }
  0x49   :  { %1864 = vmatpush1.bf16.msra.mxu0 %v2598_v7  ;;  %1824 = vmatprep.subr.bf16.mxu1 %v2599_v8  ;;  %v2616_v19 = vld [vmem:[#allocation5 + $0x3c0] ss:$24 sps:$4 sm:$0xff]   ;;  %v2619_v21 = vld [vmem:[#allocation5 + $0x3f4] ss:$24 sps:$4 sm:$0xff]   ;;  %v2622_v23 = vld [vmem:[#allocation5 + $0x3f0] ss:$24 sps:$4 sm:$0xff]  }
  0x4a   :  { %1865 = vmatprep.subr.bf16.mxu0 %v2601_v9  ;;  %v2623_v24 = vld [vmem:[#allocation5 + $0x124] ss:$24 sps:$4 sm:$0xff]   ;;  %v2627_v26 = vld [vmem:[#allocation5 + $0x120] ss:$24 sps:$4 sm:$0xff]   ;;  %v2629_v28 = vld [vmem:[#allocation5 + $0x154] ss:$24 sps:$4 sm:$0xff]  }
  0x4b   :  { %v2625_v25 = vld [vmem:[#allocation5 + $0x424] ss:$24 sps:$4 sm:$0xff]   ;;  %v2628_v27 = vld [vmem:[#allocation5 + $0x420] ss:$24 sps:$4 sm:$0xff]   ;;  %v2631_v29 = vld [vmem:[#allocation5 + $0x454] ss:$24 sps:$4 sm:$0xff]  }
  0x4c   :  { %1825 = vmatpush1.bf16.msra.mxu1 %v2603_v10  ;;  %v2633_v30 = vld [vmem:[#allocation5 + $0x150] ss:$24 sps:$4 sm:$0xff]   ;;  %v2635_v32 = vld [vmem:[#allocation5 + $0x184] ss:$24 sps:$4 sm:$0xff]   ;;  %v2639_v34 = vld [vmem:[#allocation5 + $0x180] ss:$24 sps:$4 sm:$0xff]  }
  0x4d   :  { %1866 = vmatpush1.bf16.msra.mxu0 %v2604_v11  ;;  %1826 = vmatprep.subr.bf16.mxu1 %v2605_v12  ;;  %v2634_v31 = vld [vmem:[#allocation5 + $0x450] ss:$24 sps:$4 sm:$0xff]   ;;  %v2637_v33 = vld [vmem:[#allocation5 + $0x484] ss:$24 sps:$4 sm:$0xff]   ;;  %v2640_v35 = vld [vmem:[#allocation5 + $0x480] ss:$24 sps:$4 sm:$0xff]  }
  0x4e   :  { %1867 = vmatprep.subr.bf16.mxu0 %v2607_v13  ;;  %v2641_v36 = vld [vmem:[#allocation5 + $0x1b4] ss:$24 sps:$4 sm:$0xff]   ;;  %v2645_v38 = vld [vmem:[#allocation5 + $0x1b0] ss:$24 sps:$4 sm:$0xff]   ;;  %v2647_v40 = vld [vmem:[#allocation5 + $0x1e4] ss:$24 sps:$4 sm:$0xff]  }
  0x4f   :  { %v2643_v37 = vld [vmem:[#allocation5 + $0x4b4] ss:$24 sps:$4 sm:$0xff]   ;;  %v2646_v39 = vld [vmem:[#allocation5 + $0x4b0] ss:$24 sps:$4 sm:$0xff]   ;;  %v2649_v41 = vld [vmem:[#allocation5 + $0x4e4] ss:$24 sps:$4 sm:$0xff]  }
  0x50   :  { %1827 = vmatpush1.bf16.msra.mxu1 %v2609_v14  ;;  %v2651_v42 = vld [vmem:[#allocation5 + $0x1e0] ss:$24 sps:$4 sm:$0xff]   ;;  %v2653_v44 = vld [vmem:[#allocation5 + $0x214] ss:$24 sps:$4 sm:$0xff]   ;;  %v2657_v49 = vld [vmem:[#allocation5 + $0x210] ss:$24 sps:$4 sm:$0xff]  }
  0x51   :  { %1868 = vmatpush1.bf16.msra.mxu0 %v2610_v15  ;;  %1828 = vmatprep.subr.bf16.mxu1 %v2611_v16  ;;  %v2652_v43 = vld [vmem:[#allocation5 + $0x4e0] ss:$24 sps:$4 sm:$0xff]   ;;  %v2655_v45 = vld [vmem:[#allocation5 + $0x514] ss:$24 sps:$4 sm:$0xff]   ;;  %v2658_v50 = vld [vmem:[#allocation5 + $0x510] ss:$24 sps:$4 sm:$0xff]  }
  0x52   :  { %1869 = vmatprep.subr.bf16.mxu0 %v2613_v17  ;;  %v68_v46 = vld [vmem:[#allocation2] sm:$0xff]  ;;  %v69_v48 = vld [vmem:[#allocation2 + $0x8] sm:$0xff]  ;;  %v2659_v52 = vld [vmem:[#allocation5 + $0x244] ss:$24 sps:$4 sm:$0xff]   ;;  %s2241_s3 = sld [smem:[#allocation8]]  ;;  %s2557_s4 = sld [smem:[#allocation8 + $0x1]] }
  0x53   :  { %v3207_v47 = vcombine.high %v68_v46, %v68_v46  ;;  %v3209_v51 = vcombine.high %v69_v48, %v69_v48  ;;  %v2661_v53 = vld [vmem:[#allocation5 + $0x544] ss:$24 sps:$4 sm:$0xff]   ;;  %v2663_v54 = vld [vmem:[#allocation5 + $0x240] ss:$24 sps:$4 sm:$0xff]   ;;  %v2665_v56 = vld [vmem:[#allocation5 + $0x274] ss:$24 sps:$4 sm:$0xff]   ;;  %v3213_v6 = vcombine.low %v68_v46, %v68_v46  ;;  %v3215_v7 = vcombine.low %v69_v48, %v69_v48 }
  0x54   :  { %1829 = vmatpush1.bf16.msra.mxu1 %v2615_v18  ;;  %v2664_v55 = vld [vmem:[#allocation5 + $0x540] ss:$24 sps:$4 sm:$0xff]   ;;  %v2667_v57 = vld [vmem:[#allocation5 + $0x574] ss:$24 sps:$4 sm:$0xff]   ;;  %v2669_v58 = vld [vmem:[#allocation5 + $0x270] ss:$24 sps:$4 sm:$0xff]  }
  0x55   :  { %1870 = vmatpush1.bf16.msra.mxu0 %v2616_v19  ;;  %1830 = vmatprep.subr.bf16.mxu1 %v2617_v20  ;;  %v2670_v59 = vld [vmem:[#allocation5 + $0x570] ss:$24 sps:$4 sm:$0xff]   ;;  %v2671_v60 = vld [vmem:[#allocation5 + $0x2a4] ss:$24 sps:$4 sm:$0xff]   ;;  %v2675_v62 = vld [vmem:[#allocation5 + $0x2a0] ss:$24 sps:$4 sm:$0xff]  }
  0x56   :  { %1871 = vmatprep.subr.bf16.mxu0 %v2619_v21  ;;  %1852 = vmatprep.mubr.bf16.mxu1 %v3207_v47  ;;  %v2673_v61 = vld [vmem:[#allocation5 + $0x5a4] ss:$24 sps:$4 sm:$0xff]   ;;  %v2676_v63 = vld [vmem:[#allocation5 + $0x5a0] ss:$24 sps:$4 sm:$0xff]   ;;  %v2677_v0 = vld [vmem:[#allocation5 + $0x2d4] ss:$24 sps:$4 sm:$0xff]  }
  0x57   :  { %1893 = vmatprep.mubr.bf16.mxu0 %v3209_v51  ;;  %v2679_v1 = vld [vmem:[#allocation5 + $0x5d4] ss:$24 sps:$4 sm:$0xff]   ;;  %v2681_v2 = vld [vmem:[#allocation5 + $0x2d0] ss:$24 sps:$4 sm:$0xff]   ;;  %v2687_v4 = vld [vmem:[#allocation5 + $0x604] ss:$24 sps:$4 sm:$0xff]  }
  0x58   :  { %1831 = vmatpush1.bf16.msra.mxu1 %v2621_v22  ;;  %v2682_v3 = vld [vmem:[#allocation5 + $0x5d0] ss:$24 sps:$4 sm:$0xff]   ;;  %v2690_v5 = vld [vmem:[#allocation5 + $0xc] ss:$24 sps:$4 sm:$0xff]   ;;  %v2685_v8 = vld [vmem:[#allocation5 + $0x600] ss:$24 sps:$4 sm:$0xff]  }
  0x59   :  { %1872 = vmatpush1.bf16.msra.mxu0 %v2622_v23  ;;  %1832 = vmatprep.subr.bf16.mxu1 %v2623_v24  ;;  %v2688_v9 = vld [vmem:[#allocation5 + $0x8] ss:$24 sps:$4 sm:$0xff]   ;;  %v2695_v10 = vld [vmem:[#allocation5 + $0x634] ss:$24 sps:$4 sm:$0xff]   ;;  %v2696_v13 = vld [vmem:[#allocation5 + $0x38] ss:$24 sps:$4 sm:$0xff]  }
  0x5a   :  { %1873 = vmatprep.subr.bf16.mxu0 %v2625_v25  ;;  %v2698_v11 = vld [vmem:[#allocation5 + $0x3c] ss:$24 sps:$4 sm:$0xff]   ;;  %v2693_v12 = vld [vmem:[#allocation5 + $0x630] ss:$24 sps:$4 sm:$0xff]   ;;  %v2704_v15 = vld [vmem:[#allocation5 + $0x6c] ss:$24 sps:$4 sm:$0xff]  }
  0x5b   :  { %v2701_v14 = vld [vmem:[#allocation5 + $0x664] ss:$24 sps:$4 sm:$0xff]   ;;  %v2699_v16 = vld [vmem:[#allocation5 + $0x660] ss:$24 sps:$4 sm:$0xff]   ;;  %v2707_v18 = vld [vmem:[#allocation5 + $0x694] ss:$24 sps:$4 sm:$0xff]  }
  0x5c   :  { %1833 = vmatpush1.bf16.msra.mxu1 %v2627_v26  ;;  %v2702_v17 = vld [vmem:[#allocation5 + $0x68] ss:$24 sps:$4 sm:$0xff]   ;;  %v2710_v19 = vld [vmem:[#allocation5 + $0x9c] ss:$24 sps:$4 sm:$0xff]   ;;  %v2708_v21 = vld [vmem:[#allocation5 + $0x98] ss:$24 sps:$4 sm:$0xff]  }
  0x5d   :  { %1874 = vmatpush1.bf16.msra.mxu0 %v2628_v27  ;;  %1834 = vmatprep.subr.bf16.mxu1 %v2629_v28  ;;  %v2705_v20 = vld [vmem:[#allocation5 + $0x690] ss:$24 sps:$4 sm:$0xff]   ;;  %v2713_v22 = vld [vmem:[#allocation5 + $0x6c4] ss:$24 sps:$4 sm:$0xff]   ;;  %v2711_v24 = vld [vmem:[#allocation5 + $0x6c0] ss:$24 sps:$4 sm:$0xff]  }
  0x5e   :  { %1875 = vmatprep.subr.bf16.mxu0 %v2631_v29  ;;  %v2716_v23 = vld [vmem:[#allocation5 + $0xcc] ss:$24 sps:$4 sm:$0xff]   ;;  %v2714_v25 = vld [vmem:[#allocation5 + $0xc8] ss:$24 sps:$4 sm:$0xff]   ;;  %v2722_v27 = vld [vmem:[#allocation5 + $0xfc] ss:$24 sps:$4 sm:$0xff]  }
  0x5f   :  { %v2719_v26 = vld [vmem:[#allocation5 + $0x6f4] ss:$24 sps:$4 sm:$0xff]   ;;  %v2717_v28 = vld [vmem:[#allocation5 + $0x6f0] ss:$24 sps:$4 sm:$0xff]   ;;  %vm2254_vm0 = vcmask 7168  }
  0x60   :  { %1835 = vmatpush1.bf16.msra.mxu1 %v2633_v30  ;;  %v2720_v29 = vld [vmem:[#allocation5 + $0xf8] ss:$24 sps:$4 sm:$0xff]   ;;  %v2725_v30 = vld [vmem:[#allocation5 + $0x724] ss:$24 sps:$4 sm:$0xff]  }
  0x61   :  { %1876 = vmatpush1.bf16.msra.mxu0 %v2634_v31  ;;  %1836 = vmatprep.subr.bf16.mxu1 %v2635_v32  ;;  %v2728_v31 = vld [vmem:[#allocation5 + $0x12c] ss:$24 sps:$4 sm:$0xff]   ;;  %v3220_v32 = vld [vmem:[#allocation2 + $0x10] sm:$0xff]  ;;  %v2741_v46 = vld [vmem:[#allocation5 + $0x7b0] ss:$24 sps:$4 sm:$0xff]  }
  0x62   :  { %1877 = vmatprep.subr.bf16.mxu0 %v2637_v33  ;;  %v2723_v33 = vld [vmem:[#allocation5 + $0x720] ss:$24 sps:$4 sm:$0xff]  }
  0x63   :  { %v2744_v48 = vld [vmem:[#allocation5 + $0x1b8] ss:$24 sps:$4 sm:$0xff]  }
  0x64   :  { %1837 = vmatpush1.bf16.msra.mxu1 %v2639_v34  ;;  %v3224_v34 = vcombine.high %v3220_v32, %v3220_v32 }
  0x65   :  { %1878 = vmatpush1.bf16.msra.mxu0 %v2640_v35  ;;  %1838 = vmatprep.subr.bf16.mxu1 %v2641_v36  ;;  %v2726_v35 = vld [vmem:[#allocation5 + $0x128] ss:$24 sps:$4 sm:$0xff]   ;;  %v2731_v36 = vld [vmem:[#allocation5 + $0x754] ss:$24 sps:$4 sm:$0xff]  }
  0x66   :  { %1879 = vmatprep.subr.bf16.mxu0 %v2643_v37  ;;  %v2734_v37 = vld [vmem:[#allocation5 + $0x15c] ss:$24 sps:$4 sm:$0xff]  }
  0x68   :  { %1839 = vmatpush1.bf16.msra.mxu1 %v2645_v38  ;;  %v2729_v38 = vld [vmem:[#allocation5 + $0x750] ss:$24 sps:$4 sm:$0xff]  }
  0x69   :  { %1880 = vmatpush1.bf16.msra.mxu0 %v2646_v39  ;;  %1840 = vmatprep.subr.bf16.mxu1 %v2647_v40  ;;  %v2732_v39 = vld [vmem:[#allocation5 + $0x158] ss:$24 sps:$4 sm:$0xff]   ;;  %v2737_v40 = vld [vmem:[#allocation5 + $0x784] ss:$24 sps:$4 sm:$0xff]  }
  0x6a   :  { %1881 = vmatprep.subr.bf16.mxu0 %v2649_v41  ;;  %v2740_v41 = vld [vmem:[#allocation5 + $0x18c] ss:$24 sps:$4 sm:$0xff]  }
  0x6c   :  { %1841 = vmatpush1.bf16.msra.mxu1 %v2651_v42  ;;  %v2735_v42 = vld [vmem:[#allocation5 + $0x780] ss:$24 sps:$4 sm:$0xff]  }
  0x6d   :  { %1882 = vmatpush1.bf16.msra.mxu0 %v2652_v43  ;;  %1842 = vmatprep.subr.bf16.mxu1 %v2653_v44  ;;  %v2738_v43 = vld [vmem:[#allocation5 + $0x188] ss:$24 sps:$4 sm:$0xff]   ;;  %v2743_v44 = vld [vmem:[#allocation5 + $0x7b4] ss:$24 sps:$4 sm:$0xff]  }
  0x6e   :  { %1883 = vmatprep.subr.bf16.mxu0 %v2655_v45  ;;  %v2746_v45 = vld [vmem:[#allocation5 + $0x1bc] ss:$24 sps:$4 sm:$0xff]  }
  0x70   :  { %1843 = vmatpush1.bf16.msra.mxu1 %v2657_v49  ;;  %v2749_v49 = vld [vmem:[#allocation5 + $0x7e4] ss:$24 sps:$4 sm:$0xff]  }
  0x71   :  { %1884 = vmatpush1.bf16.msra.mxu0 %v2658_v50  ;;  %1844 = vmatprep.subr.bf16.mxu1 %v2659_v52  ;;  %v2752_v50 = vld [vmem:[#allocation5 + $0x1ec] ss:$24 sps:$4 sm:$0xff]   ;;  %v2747_v52 = vld [vmem:[#allocation5 + $0x7e0] ss:$24 sps:$4 sm:$0xff]  }
  0x72   :  { %1885 = vmatprep.subr.bf16.mxu0 %v2661_v53  ;;  %v2750_v53 = vld [vmem:[#allocation5 + $0x1e8] ss:$24 sps:$4 sm:$0xff]  }
  0x74   :  { %1845 = vmatpush1.bf16.msra.mxu1 %v2663_v54  ;;  %v2755_v54 = vld [vmem:[#allocation5 + $0x814] ss:$24 sps:$4 sm:$0xff]  }
  0x75   :  { %1886 = vmatpush1.bf16.msra.mxu0 %v2664_v55  ;;  %1846 = vmatprep.subr.bf16.mxu1 %v2665_v56  ;;  %v2758_v55 = vld [vmem:[#allocation5 + $0x21c] ss:$24 sps:$4 sm:$0xff]   ;;  %v2753_v56 = vld [vmem:[#allocation5 + $0x810] ss:$24 sps:$4 sm:$0xff]  }
  0x76   :  { %1887 = vmatprep.subr.bf16.mxu0 %v2667_v57  ;;  %v2756_v57 = vld [vmem:[#allocation5 + $0x218] ss:$24 sps:$4 sm:$0xff]  }
  0x78   :  { %1847 = vmatpush1.bf16.msra.mxu1 %v2669_v58  ;;  %v2761_v58 = vld [vmem:[#allocation5 + $0x844] ss:$24 sps:$4 sm:$0xff]  }
  0x79   :  { %1888 = vmatpush1.bf16.msra.mxu0 %v2670_v59  ;;  %1848 = vmatprep.subr.bf16.mxu1 %v2671_v60  ;;  %v2764_v59 = vld [vmem:[#allocation5 + $0x24c] ss:$24 sps:$4 sm:$0xff]   ;;  %v2759_v60 = vld [vmem:[#allocation5 + $0x840] ss:$24 sps:$4 sm:$0xff]  }
  0x7a   :  { %1889 = vmatprep.subr.bf16.mxu0 %v2673_v61  ;;  %v2762_v61 = vld [vmem:[#allocation5 + $0x248] ss:$24 sps:$4 sm:$0xff]  }
  0x7c   :  { %1849 = vmatpush1.bf16.msra.mxu1 %v2675_v62  ;;  %v2767_v62 = vld [vmem:[#allocation5 + $0x874] ss:$24 sps:$4 sm:$0xff]  }
  0x7d   :  { %1890 = vmatpush1.bf16.msra.mxu0 %v2676_v63  ;;  %1850 = vmatprep.subr.bf16.mxu1 %v2677_v0  ;;  %v2770_v63 = vld [vmem:[#allocation5 + $0x27c] ss:$24 sps:$4 sm:$0xff]   ;;  %v2765_v0 = vld [vmem:[#allocation5 + $0x870] ss:$24 sps:$4 sm:$0xff]  }
  0x7e   :  { %1891 = vmatprep.subr.bf16.mxu0 %v2679_v1  ;;  %v2768_v1 = vld [vmem:[#allocation5 + $0x278] ss:$24 sps:$4 sm:$0xff]  }
  0x80   :  { %1851 = vmatpush1.bf16.msra.mxu1 %v2681_v2  ;;  %v2773_v2 = vld [vmem:[#allocation5 + $0x8a4] ss:$24 sps:$4 sm:$0xff]  }
  0x81   :  { %1892 = vmatpush1.bf16.msra.mxu0 %v2682_v3  ;;  %1943 = vmatprep.subr.bf16.mxu1 %v2690_v5  ;;  %v2776_v3 = vld [vmem:[#allocation5 + $0x2ac] ss:$24 sps:$4 sm:$0xff]   ;;  %v2774_v5 = vld [vmem:[#allocation5 + $0x2a8] ss:$24 sps:$4 sm:$0xff]  }
  0x82   :  { %1902 = vmatprep.subr.bf16.mxu0 %v2687_v4  ;;  %v2771_v4 = vld [vmem:[#allocation5 + $0x8a0] ss:$24 sps:$4 sm:$0xff]  }
  0x83   :  { %1853 = vmatmul.mubr.bf16.vlgmr.msra.gmra.mrb[0].mxu1 %v3213_v6 }
  0x84   :  { %1894 = vmatmul.mubr.bf16.vlgmr.msra.gmra.mrb[0].mxu0 %v3215_v7  ;;  %1944 = vmatpush1.bf16.msra.mxu1 %v2688_v9  ;;  %v2782_v9 = vld [vmem:[#allocation5 + $0x2dc] ss:$24 sps:$4 sm:$0xff]  }
  0x85   :  { %1903 = vmatpush1.bf16.msra.mxu0 %v2685_v8  ;;  %1945 = vmatprep.subr.bf16.mxu1 %v2698_v11  ;;  %v2779_v8 = vld [vmem:[#allocation5 + $0x8d4] ss:$24 sps:$4 sm:$0xff]   ;;  %v2780_v11 = vld [vmem:[#allocation5 + $0x2d8] ss:$24 sps:$4 sm:$0xff]  }
  0x86   :  { %1904 = vmatprep.subr.bf16.mxu0 %v2695_v10  ;;  %1975 = vmatprep.mubr.bf16.mxu1 %v3207_v47  ;;  %v2777_v10 = vld [vmem:[#allocation5 + $0x8d0] ss:$24 sps:$4 sm:$0xff]  }
  0x87   :  { %1934 = vmatprep.mubr.bf16.mxu0 %v3224_v34 }
  0x88   :  { %1946 = vmatpush1.bf16.msra.mxu1 %v2696_v13  ;;  %v2790_v13 = vld [vmem:[#allocation5 + $0x14] ss:$24 sps:$4 sm:$0xff]  }
  0x89   :  { %1905 = vmatpush1.bf16.msra.mxu0 %v2693_v12  ;;  %1947 = vmatprep.subr.bf16.mxu1 %v2704_v15  ;;  %v2787_v12 = vld [vmem:[#allocation5 + $0x30c] ss:$24 sps:$4 sm:$0xff]   ;;  %v2785_v15 = vld [vmem:[#allocation5 + $0x308] ss:$24 sps:$4 sm:$0xff]  }
  0x8a   :  { %1906 = vmatprep.subr.bf16.mxu0 %v2701_v14  ;;  %v3229_v14 = vcombine.low %v3220_v32, %v3220_v32  ;;  %v2817_v32 = vld [vmem:[#allocation5 + $0x3fc] ss:$24 sps:$4 sm:$0xff]  }
  0x8c   :  { %1948 = vmatpush1.bf16.msra.mxu1 %v2702_v17  ;;  %v2793_v17 = vld [vmem:[#allocation5 + $0x33c] ss:$24 sps:$4 sm:$0xff]  }
  0x8d   :  { %1907 = vmatpush1.bf16.msra.mxu0 %v2699_v16  ;;  %1949 = vmatprep.subr.bf16.mxu1 %v2710_v19  ;;  %v2788_v16 = vld [vmem:[#allocation5 + $0x10] ss:$24 sps:$4 sm:$0xff]  }
  0x8e   :  { %1908 = vmatprep.subr.bf16.mxu0 %v2707_v18  ;;  %v2796_v18 = vld [vmem:[#allocation5 + $0x44] ss:$24 sps:$4 sm:$0xff]   ;;  %v2791_v19 = vld [vmem:[#allocation5 + $0x338] ss:$24 sps:$4 sm:$0xff]  }
  0x90   :  { %1950 = vmatpush1.bf16.msra.mxu1 %v2708_v21  ;;  %v2799_v21 = vld [vmem:[#allocation5 + $0x36c] ss:$24 sps:$4 sm:$0xff]  }
  0x91   :  { %1909 = vmatpush1.bf16.msra.mxu0 %v2705_v20  ;;  %1951 = vmatprep.subr.bf16.mxu1 %v2716_v23  ;;  %v2794_v20 = vld [vmem:[#allocation5 + $0x40] ss:$24 sps:$4 sm:$0xff]  }
  0x92   :  { %1910 = vmatprep.subr.bf16.mxu0 %v2713_v22  ;;  %v2802_v22 = vld [vmem:[#allocation5 + $0x74] ss:$24 sps:$4 sm:$0xff]   ;;  %v2797_v23 = vld [vmem:[#allocation5 + $0x368] ss:$24 sps:$4 sm:$0xff]  }
  0x94   :  { %1952 = vmatpush1.bf16.msra.mxu1 %v2714_v25  ;;  %v2805_v25 = vld [vmem:[#allocation5 + $0x39c] ss:$24 sps:$4 sm:$0xff]  }
  0x95   :  { %1911 = vmatpush1.bf16.msra.mxu0 %v2711_v24  ;;  %1953 = vmatprep.subr.bf16.mxu1 %v2722_v27  ;;  %v2800_v24 = vld [vmem:[#allocation5 + $0x70] ss:$24 sps:$4 sm:$0xff]  }
  0x96   :  { %1912 = vmatprep.subr.bf16.mxu0 %v2719_v26  ;;  %v2808_v26 = vld [vmem:[#allocation5 + $0xa4] ss:$24 sps:$4 sm:$0xff]   ;;  %v2803_v27 = vld [vmem:[#allocation5 + $0x398] ss:$24 sps:$4 sm:$0xff]  }
  0x98   :  { %1954 = vmatpush1.bf16.msra.mxu1 %v2720_v29  ;;  %v2811_v29 = vld [vmem:[#allocation5 + $0x3cc] ss:$24 sps:$4 sm:$0xff]  }
  0x99   :  { %1913 = vmatpush1.bf16.msra.mxu0 %v2717_v28  ;;  %1955 = vmatprep.subr.bf16.mxu1 %v2728_v31  ;;  %v2806_v28 = vld [vmem:[#allocation5 + $0xa0] ss:$24 sps:$4 sm:$0xff]  }
  0x9a   :  { %1914 = vmatprep.subr.bf16.mxu0 %v2725_v30  ;;  %v2814_v30 = vld [vmem:[#allocation5 + $0xd4] ss:$24 sps:$4 sm:$0xff]   ;;  %v2809_v31 = vld [vmem:[#allocation5 + $0x3c8] ss:$24 sps:$4 sm:$0xff]  }
  0x9c   :  { %1956 = vmatpush1.bf16.msra.mxu1 %v2726_v35  ;;  %v2815_v35 = vld [vmem:[#allocation5 + $0x3f8] ss:$24 sps:$4 sm:$0xff]  }
  0x9d   :  { %1915 = vmatpush1.bf16.msra.mxu0 %v2723_v33  ;;  %1957 = vmatprep.subr.bf16.mxu1 %v2734_v37  ;;  %v2820_v33 = vld [vmem:[#allocation5 + $0x104] ss:$24 sps:$4 sm:$0xff]  }
  0x9e   :  { %1916 = vmatprep.subr.bf16.mxu0 %v2731_v36  ;;  %v2818_v36 = vld [vmem:[#allocation5 + $0x100] ss:$24 sps:$4 sm:$0xff]   ;;  %v2823_v37 = vld [vmem:[#allocation5 + $0x42c] ss:$24 sps:$4 sm:$0xff]  }
  0xa0   :  { %1958 = vmatpush1.bf16.msra.mxu1 %v2732_v39  ;;  %v2821_v39 = vld [vmem:[#allocation5 + $0x428] ss:$24 sps:$4 sm:$0xff]  }
  0xa1   :  { %1917 = vmatpush1.bf16.msra.mxu0 %v2729_v38  ;;  %1959 = vmatprep.subr.bf16.mxu1 %v2740_v41  ;;  %v2826_v38 = vld [vmem:[#allocation5 + $0x134] ss:$24 sps:$4 sm:$0xff]  }
  0xa2   :  { %1918 = vmatprep.subr.bf16.mxu0 %v2737_v40  ;;  %v2824_v40 = vld [vmem:[#allocation5 + $0x130] ss:$24 sps:$4 sm:$0xff]   ;;  %v2829_v41 = vld [vmem:[#allocation5 + $0x45c] ss:$24 sps:$4 sm:$0xff]  }
  0xa4   :  { %1960 = vmatpush1.bf16.msra.mxu1 %v2738_v43  ;;  %v2827_v43 = vld [vmem:[#allocation5 + $0x458] ss:$24 sps:$4 sm:$0xff]  }
  0xa5   :  { %1919 = vmatpush1.bf16.msra.mxu0 %v2735_v42  ;;  %1961 = vmatprep.subr.bf16.mxu1 %v2746_v45  ;;  %v2832_v42 = vld [vmem:[#allocation5 + $0x164] ss:$24 sps:$4 sm:$0xff]  }
  0xa6   :  { %1920 = vmatprep.subr.bf16.mxu0 %v2743_v44  ;;  %v2830_v44 = vld [vmem:[#allocation5 + $0x160] ss:$24 sps:$4 sm:$0xff]   ;;  %v2835_v45 = vld [vmem:[#allocation5 + $0x48c] ss:$24 sps:$4 sm:$0xff]  }
  0xa8   :  { %1962 = vmatpush1.bf16.msra.mxu1 %v2744_v48  ;;  %v2833_v48 = vld [vmem:[#allocation5 + $0x488] ss:$24 sps:$4 sm:$0xff]  }
  0xa9   :  { %1921 = vmatpush1.bf16.msra.mxu0 %v2741_v46  ;;  %1963 = vmatprep.subr.bf16.mxu1 %v2752_v50  ;;  %v2838_v46 = vld [vmem:[#allocation5 + $0x194] ss:$24 sps:$4 sm:$0xff]  }
  0xaa   :  { %1922 = vmatprep.subr.bf16.mxu0 %v2749_v49  ;;  %v2836_v49 = vld [vmem:[#allocation5 + $0x190] ss:$24 sps:$4 sm:$0xff]   ;;  %v2841_v50 = vld [vmem:[#allocation5 + $0x4bc] ss:$24 sps:$4 sm:$0xff]  }
  0xac   :  { %1964 = vmatpush1.bf16.msra.mxu1 %v2750_v53  ;;  %v2839_v53 = vld [vmem:[#allocation5 + $0x4b8] ss:$24 sps:$4 sm:$0xff]  }
  0xad   :  { %1923 = vmatpush1.bf16.msra.mxu0 %v2747_v52  ;;  %1965 = vmatprep.subr.bf16.mxu1 %v2758_v55  ;;  %v2844_v52 = vld [vmem:[#allocation5 + $0x1c4] ss:$24 sps:$4 sm:$0xff]  }
  0xae   :  { %1924 = vmatprep.subr.bf16.mxu0 %v2755_v54  ;;  %v2842_v54 = vld [vmem:[#allocation5 + $0x1c0] ss:$24 sps:$4 sm:$0xff]   ;;  %v2847_v55 = vld [vmem:[#allocation5 + $0x4ec] ss:$24 sps:$4 sm:$0xff]  }
  0xb0   :  { %1966 = vmatpush1.bf16.msra.mxu1 %v2756_v57  ;;  %v2845_v57 = vld [vmem:[#allocation5 + $0x4e8] ss:$24 sps:$4 sm:$0xff]  }
  0xb1   :  { %1925 = vmatpush1.bf16.msra.mxu0 %v2753_v56  ;;  %1967 = vmatprep.subr.bf16.mxu1 %v2764_v59  ;;  %v2850_v56 = vld [vmem:[#allocation5 + $0x1f4] ss:$24 sps:$4 sm:$0xff]  }
  0xb2   :  { %1926 = vmatprep.subr.bf16.mxu0 %v2761_v58  ;;  %v2848_v58 = vld [vmem:[#allocation5 + $0x1f0] ss:$24 sps:$4 sm:$0xff]   ;;  %v2853_v59 = vld [vmem:[#allocation5 + $0x51c] ss:$24 sps:$4 sm:$0xff]  }
  0xb4   :  { %1968 = vmatpush1.bf16.msra.mxu1 %v2762_v61  ;;  %v2851_v61 = vld [vmem:[#allocation5 + $0x518] ss:$24 sps:$4 sm:$0xff]  }
  0xb5   :  { %1927 = vmatpush1.bf16.msra.mxu0 %v2759_v60  ;;  %1969 = vmatprep.subr.bf16.mxu1 %v2770_v63  ;;  %v2856_v60 = vld [vmem:[#allocation5 + $0x224] ss:$24 sps:$4 sm:$0xff]  }
  0xb6   :  { %1928 = vmatprep.subr.bf16.mxu0 %v2767_v62  ;;  %v2854_v62 = vld [vmem:[#allocation5 + $0x220] ss:$24 sps:$4 sm:$0xff]   ;;  %v2859_v63 = vld [vmem:[#allocation5 + $0x54c] ss:$24 sps:$4 sm:$0xff]  }
  0xb8   :  { %1970 = vmatpush1.bf16.msra.mxu1 %v2768_v1  ;;  %v2857_v1 = vld [vmem:[#allocation5 + $0x548] ss:$24 sps:$4 sm:$0xff]  }
  0xb9   :  { %1929 = vmatpush1.bf16.msra.mxu0 %v2765_v0  ;;  %1971 = vmatprep.subr.bf16.mxu1 %v2776_v3  ;;  %v2862_v0 = vld [vmem:[#allocation5 + $0x254] ss:$24 sps:$4 sm:$0xff]  }
  0xba   :  { %1930 = vmatprep.subr.bf16.mxu0 %v2773_v2  ;;  %v2860_v2 = vld [vmem:[#allocation5 + $0x250] ss:$24 sps:$4 sm:$0xff]   ;;  %v2865_v3 = vld [vmem:[#allocation5 + $0x57c] ss:$24 sps:$4 sm:$0xff]  }
  0xbc   :  { %1972 = vmatpush1.bf16.msra.mxu1 %v2774_v5  ;;  %v2863_v5 = vld [vmem:[#allocation5 + $0x578] ss:$24 sps:$4 sm:$0xff]  }
  0xbd   :  { %1931 = vmatpush1.bf16.msra.mxu0 %v2771_v4  ;;  %1973 = vmatprep.subr.bf16.mxu1 %v2782_v9  ;;  %v2868_v4 = vld [vmem:[#allocation5 + $0x284] ss:$24 sps:$4 sm:$0xff]  }
  0xbe   :  { %1932 = vmatprep.subr.bf16.mxu0 %v2779_v8  ;;  %v2866_v8 = vld [vmem:[#allocation5 + $0x280] ss:$24 sps:$4 sm:$0xff]   ;;  %v2871_v9 = vld [vmem:[#allocation5 + $0x5ac] ss:$24 sps:$4 sm:$0xff]  }
  0xc0   :  { %1974 = vmatpush1.bf16.msra.mxu1 %v2780_v11  ;;  %v2869_v11 = vld [vmem:[#allocation5 + $0x5a8] ss:$24 sps:$4 sm:$0xff]  }
  0xc1   :  { %1933 = vmatpush1.bf16.msra.mxu0 %v2777_v10  ;;  %1984 = vmatprep.subr.bf16.mxu1 %v2787_v12  ;;  %v2874_v10 = vld [vmem:[#allocation5 + $0x2b4] ss:$24 sps:$4 sm:$0xff]   ;;  %v2872_v12 = vld [vmem:[#allocation5 + $0x2b0] ss:$24 sps:$4 sm:$0xff]  }
  0xc2   :  { %2066 = vmatprep.subr.bf16.mxu0 %v2790_v13  ;;  %v2877_v13 = vld [vmem:[#allocation5 + $0x5dc] ss:$24 sps:$4 sm:$0xff]  }
  0xc3   :  { %1976 = vmatmul.mubr.bf16.vlgmr.msra.gmra.mrb[4].mxu1 %v3213_v6 }
  0xc4   :  { %1935 = vmatmul.mubr.bf16.vlgmr.msra.gmra.mrb[0].mxu0 %v3229_v14  ;;  %1985 = vmatpush1.bf16.msra.mxu1 %v2785_v15  ;;  %v2880_v15 = vld [vmem:[#allocation5 + $0x2e4] ss:$24 sps:$4 sm:$0xff]  }
  0xc5   :  { %2067 = vmatpush1.bf16.msra.mxu0 %v2788_v16  ;;  %1986 = vmatprep.subr.bf16.mxu1 %v2793_v17  ;;  %v2875_v16 = vld [vmem:[#allocation5 + $0x5d8] ss:$24 sps:$4 sm:$0xff]  }
  0xc6   :  { %2068 = vmatprep.subr.bf16.mxu0 %v2796_v18  ;;  %2016 = vmatprep.mubr.bf16.mxu1 %v3209_v51  ;;  %v2878_v17 = vld [vmem:[#allocation5 + $0x2e0] ss:$24 sps:$4 sm:$0xff]   ;;  %v2883_v18 = vld [vmem:[#allocation5 + $0x60c] ss:$24 sps:$4 sm:$0xff]  }
  0xc7   :  { %2098 = vmatprep.mubr.bf16.mxu0 %v3207_v47  ;;  %v2812_v47 = vld [vmem:[#allocation5 + $0xd0] ss:$24 sps:$4 sm:$0xff]  }
  0xc8   :  { %1987 = vmatpush1.bf16.msra.mxu1 %v2791_v19  ;;  %v2886_v19 = vld [vmem:[#allocation5 + $0x314] ss:$24 sps:$4 sm:$0xff]  }
  0xc9   :  { %2069 = vmatpush1.bf16.msra.mxu0 %v2794_v20  ;;  %1988 = vmatprep.subr.bf16.mxu1 %v2799_v21  ;;  %v2881_v20 = vld [vmem:[#allocation5 + $0x608] ss:$24 sps:$4 sm:$0xff]  }
  0xca   :  { %2070 = vmatprep.subr.bf16.mxu0 %v2802_v22  ;;  %v2884_v21 = vld [vmem:[#allocation5 + $0x310] ss:$24 sps:$4 sm:$0xff]   ;;  %v2889_v22 = vld [vmem:[#allocation5 + $0x63c] ss:$24 sps:$4 sm:$0xff]  }
  0xcc   :  { %1989 = vmatpush1.bf16.msra.mxu1 %v2797_v23  ;;  %v2892_v23 = vld [vmem:[#allocation5 + $0x344] ss:$24 sps:$4 sm:$0xff]  }
  0xcd   :  { %2071 = vmatpush1.bf16.msra.mxu0 %v2800_v24  ;;  %1990 = vmatprep.subr.bf16.mxu1 %v2805_v25  ;;  %v2887_v24 = vld [vmem:[#allocation5 + $0x638] ss:$24 sps:$4 sm:$0xff]  }
  0xce   :  { %2072 = vmatprep.subr.bf16.mxu0 %v2808_v26  ;;  %v2890_v25 = vld [vmem:[#allocation5 + $0x340] ss:$24 sps:$4 sm:$0xff]   ;;  %v2895_v26 = vld [vmem:[#allocation5 + $0x66c] ss:$24 sps:$4 sm:$0xff]  }
  0xd0   :  { %1991 = vmatpush1.bf16.msra.mxu1 %v2803_v27  ;;  %v2898_v27 = vld [vmem:[#allocation5 + $0x374] ss:$24 sps:$4 sm:$0xff]  }
  0xd1   :  { %2073 = vmatpush1.bf16.msra.mxu0 %v2806_v28  ;;  %1992 = vmatprep.subr.bf16.mxu1 %v2811_v29  ;;  %v2893_v28 = vld [vmem:[#allocation5 + $0x668] ss:$24 sps:$4 sm:$0xff]  }
  0xd2   :  { %2074 = vmatprep.subr.bf16.mxu0 %v2814_v30  ;;  %v2896_v29 = vld [vmem:[#allocation5 + $0x370] ss:$24 sps:$4 sm:$0xff]   ;;  %v2901_v30 = vld [vmem:[#allocation5 + $0x69c] ss:$24 sps:$4 sm:$0xff]  }
  0xd4   :  { %1993 = vmatpush1.bf16.msra.mxu1 %v2809_v31  ;;  %v2899_v31 = vld [vmem:[#allocation5 + $0x698] ss:$24 sps:$4 sm:$0xff]  }
  0xd5   :  { %2075 = vmatpush1.bf16.msra.mxu0 %v2812_v47  ;;  %1994 = vmatprep.subr.bf16.mxu1 %v2817_v32  ;;  %v2902_v47 = vld [vmem:[#allocation5 + $0x3a0] ss:$24 sps:$4 sm:$0xff]   ;;  %v2907_v32 = vld [vmem:[#allocation5 + $0x6cc] ss:$24 sps:$4 sm:$0xff]  }
  0xd6   :  { %2076 = vmatprep.subr.bf16.mxu0 %v2820_v33  ;;  %v2910_v33 = vld [vmem:[#allocation5 + $0x3d4] ss:$24 sps:$4 sm:$0xff]  }
  0xd8   :  { %1995 = vmatpush1.bf16.msra.mxu1 %v2815_v35  ;;  %v2905_v35 = vld [vmem:[#allocation5 + $0x6c8] ss:$24 sps:$4 sm:$0xff]  }
  0xd9   :  { %2077 = vmatpush1.bf16.msra.mxu0 %v2818_v36  ;;  %1996 = vmatprep.subr.bf16.mxu1 %v2823_v37  ;;  %v2913_v36 = vld [vmem:[#allocation5 + $0x6fc] ss:$24 sps:$4 sm:$0xff]  }
  0xda   :  { %2078 = vmatprep.subr.bf16.mxu0 %v2826_v38  ;;  %v2916_v37 = vld [vmem:[#allocation5 + $0x404] ss:$24 sps:$4 sm:$0xff]   ;;  %v2911_v38 = vld [vmem:[#allocation5 + $0x6f8] ss:$24 sps:$4 sm:$0xff]  }
  0xdc   :  { %1997 = vmatpush1.bf16.msra.mxu1 %v2821_v39  ;;  %v2914_v39 = vld [vmem:[#allocation5 + $0x400] ss:$24 sps:$4 sm:$0xff]  }
  0xdd   :  { %2079 = vmatpush1.bf16.msra.mxu0 %v2824_v40  ;;  %1998 = vmatprep.subr.bf16.mxu1 %v2829_v41  ;;  %v2919_v40 = vld [vmem:[#allocation5 + $0x72c] ss:$24 sps:$4 sm:$0xff]  }
  0xde   :  { %2080 = vmatprep.subr.bf16.mxu0 %v2832_v42  ;;  %v2922_v41 = vld [vmem:[#allocation5 + $0x434] ss:$24 sps:$4 sm:$0xff]   ;;  %v2917_v42 = vld [vmem:[#allocation5 + $0x728] ss:$24 sps:$4 sm:$0xff]  }
  0xe0   :  { %1999 = vmatpush1.bf16.msra.mxu1 %v2827_v43  ;;  %v2920_v43 = vld [vmem:[#allocation5 + $0x430] ss:$24 sps:$4 sm:$0xff]  }
  0xe1   :  { %2081 = vmatpush1.bf16.msra.mxu0 %v2830_v44  ;;  %2000 = vmatprep.subr.bf16.mxu1 %v2835_v45  ;;  %v2925_v44 = vld [vmem:[#allocation5 + $0x75c] ss:$24 sps:$4 sm:$0xff]  }
  0xe2   :  { %2082 = vmatprep.subr.bf16.mxu0 %v2838_v46  ;;  %v2928_v45 = vld [vmem:[#allocation5 + $0x464] ss:$24 sps:$4 sm:$0xff]   ;;  %v2923_v46 = vld [vmem:[#allocation5 + $0x758] ss:$24 sps:$4 sm:$0xff]  }
  0xe4   :  { %2001 = vmatpush1.bf16.msra.mxu1 %v2833_v48  ;;  %v2926_v48 = vld [vmem:[#allocation5 + $0x460] ss:$24 sps:$4 sm:$0xff]  }
  0xe5   :  { %2083 = vmatpush1.bf16.msra.mxu0 %v2836_v49  ;;  %2002 = vmatprep.subr.bf16.mxu1 %v2841_v50  ;;  %v2931_v49 = vld [vmem:[#allocation5 + $0x78c] ss:$24 sps:$4 sm:$0xff]  }
  0xe6   :  { %2084 = vmatprep.subr.bf16.mxu0 %v2844_v52  ;;  %v2934_v50 = vld [vmem:[#allocation5 + $0x494] ss:$24 sps:$4 sm:$0xff]   ;;  %v2929_v52 = vld [vmem:[#allocation5 + $0x788] ss:$24 sps:$4 sm:$0xff]  }
  0xe8   :  { %2003 = vmatpush1.bf16.msra.mxu1 %v2839_v53  ;;  %v2932_v53 = vld [vmem:[#allocation5 + $0x490] ss:$24 sps:$4 sm:$0xff]  }
  0xe9   :  { %2085 = vmatpush1.bf16.msra.mxu0 %v2842_v54  ;;  %2004 = vmatprep.subr.bf16.mxu1 %v2847_v55  ;;  %v2937_v54 = vld [vmem:[#allocation5 + $0x7bc] ss:$24 sps:$4 sm:$0xff]  }
  0xea   :  { %2086 = vmatprep.subr.bf16.mxu0 %v2850_v56  ;;  %v2940_v55 = vld [vmem:[#allocation5 + $0x4c4] ss:$24 sps:$4 sm:$0xff]   ;;  %v2935_v56 = vld [vmem:[#allocation5 + $0x7b8] ss:$24 sps:$4 sm:$0xff]  }
  0xec   :  { %2005 = vmatpush1.bf16.msra.mxu1 %v2845_v57  ;;  %v2938_v57 = vld [vmem:[#allocation5 + $0x4c0] ss:$24 sps:$4 sm:$0xff]  }
  0xed   :  { %2087 = vmatpush1.bf16.msra.mxu0 %v2848_v58  ;;  %2006 = vmatprep.subr.bf16.mxu1 %v2853_v59  ;;  %v2943_v58 = vld [vmem:[#allocation5 + $0x7ec] ss:$24 sps:$4 sm:$0xff]  }
  0xee   :  { %2088 = vmatprep.subr.bf16.mxu0 %v2856_v60  ;;  %v2946_v59 = vld [vmem:[#allocation5 + $0x4f4] ss:$24 sps:$4 sm:$0xff]   ;;  %v2941_v60 = vld [vmem:[#allocation5 + $0x7e8] ss:$24 sps:$4 sm:$0xff]  }
  0xf0   :  { %2007 = vmatpush1.bf16.msra.mxu1 %v2851_v61  ;;  %v2944_v61 = vld [vmem:[#allocation5 + $0x4f0] ss:$24 sps:$4 sm:$0xff]  }
  0xf1   :  { %2089 = vmatpush1.bf16.msra.mxu0 %v2854_v62  ;;  %2008 = vmatprep.subr.bf16.mxu1 %v2859_v63  ;;  %v2949_v62 = vld [vmem:[#allocation5 + $0x81c] ss:$24 sps:$4 sm:$0xff]  }
  0xf2   :  { %2090 = vmatprep.subr.bf16.mxu0 %v2862_v0  ;;  %v2952_v63 = vld [vmem:[#allocation5 + $0x524] ss:$24 sps:$4 sm:$0xff]   ;;  %v2947_v0 = vld [vmem:[#allocation5 + $0x818] ss:$24 sps:$4 sm:$0xff]  }
  0xf4   :  { %2009 = vmatpush1.bf16.msra.mxu1 %v2857_v1  ;;  %v2950_v1 = vld [vmem:[#allocation5 + $0x520] ss:$24 sps:$4 sm:$0xff]  }
  0xf5   :  { %2091 = vmatpush1.bf16.msra.mxu0 %v2860_v2  ;;  %2010 = vmatprep.subr.bf16.mxu1 %v2865_v3  ;;  %v2955_v2 = vld [vmem:[#allocation5 + $0x84c] ss:$24 sps:$4 sm:$0xff]  }
  0xf6   :  { %2092 = vmatprep.subr.bf16.mxu0 %v2868_v4  ;;  %v2958_v3 = vld [vmem:[#allocation5 + $0x554] ss:$24 sps:$4 sm:$0xff]   ;;  %v2953_v4 = vld [vmem:[#allocation5 + $0x848] ss:$24 sps:$4 sm:$0xff]  }
  0xf8   :  { %2011 = vmatpush1.bf16.msra.mxu1 %v2863_v5  ;;  %v2956_v5 = vld [vmem:[#allocation5 + $0x550] ss:$24 sps:$4 sm:$0xff]  }
  0xf9   :  { %2093 = vmatpush1.bf16.msra.mxu0 %v2866_v8  ;;  %2012 = vmatprep.subr.bf16.mxu1 %v2871_v9  ;;  %v2961_v8 = vld [vmem:[#allocation5 + $0x87c] ss:$24 sps:$4 sm:$0xff]  }
  0xfa   :  { %2094 = vmatprep.subr.bf16.mxu0 %v2874_v10  ;;  %v2964_v9 = vld [vmem:[#allocation5 + $0x584] ss:$24 sps:$4 sm:$0xff]   ;;  %v2959_v10 = vld [vmem:[#allocation5 + $0x878] ss:$24 sps:$4 sm:$0xff]  }
  0xfc   :  { %2013 = vmatpush1.bf16.msra.mxu1 %v2869_v11  ;;  %v2962_v11 = vld [vmem:[#allocation5 + $0x580] ss:$24 sps:$4 sm:$0xff]  }
  0xfd   :  { %2095 = vmatpush1.bf16.msra.mxu0 %v2872_v12  ;;  %2014 = vmatprep.subr.bf16.mxu1 %v2877_v13  ;;  %v2967_v12 = vld [vmem:[#allocation5 + $0x8ac] ss:$24 sps:$4 sm:$0xff]  }
  0xfe   :  { %2096 = vmatprep.subr.bf16.mxu0 %v2880_v15  ;;  %v2970_v13 = vld [vmem:[#allocation5 + $0x5b4] ss:$24 sps:$4 sm:$0xff]   ;;  %v2965_v15 = vld [vmem:[#allocation5 + $0x8a8] ss:$24 sps:$4 sm:$0xff]  }
 0x100   :  { %2015 = vmatpush1.bf16.msra.mxu1 %v2875_v16  ;;  %v2968_v16 = vld [vmem:[#allocation5 + $0x5b0] ss:$24 sps:$4 sm:$0xff]  }
 0x101   :  { %2097 = vmatpush1.bf16.msra.mxu0 %v2878_v17  ;;  %2025 = vmatprep.subr.bf16.mxu1 %v2883_v18  ;;  %v2973_v17 = vld [vmem:[#allocation5 + $0x8dc] ss:$24 sps:$4 sm:$0xff]  }
 0x102   :  { %2107 = vmatprep.subr.bf16.mxu0 %v2886_v19  ;;  %v2976_v18 = vld [vmem:[#allocation5 + $0x5e4] ss:$24 sps:$4 sm:$0xff]   ;;  %v2971_v19 = vld [vmem:[#allocation5 + $0x8d8] ss:$24 sps:$4 sm:$0xff]  }
 0x103   :  { %2017 = vmatmul.mubr.bf16.vlgmr.msra.gmra.mrb[4].mxu1 %v3215_v7 }
 0x104   :  { %2099 = vmatmul.mubr.bf16.vlgmr.msra.gmra.mrb[4].mxu0 %v3213_v6  ;;  %2026 = vmatpush1.bf16.msra.mxu1 %v2881_v20  ;;  %v2904_v6 = vld [vmem:[#allocation5 + $0x3a4] ss:$24 sps:$4 sm:$0xff]   ;;  %v2974_v20 = vld [vmem:[#allocation5 + $0x5e0] ss:$24 sps:$4 sm:$0xff]  }
 0x105   :  { %2108 = vmatpush1.bf16.msra.mxu0 %v2884_v21  ;;  %2027 = vmatprep.subr.bf16.mxu1 %v2889_v22  ;;  %v2979_v21 = vld [vmem:[#allocation5 + $0x614] ss:$24 sps:$4 sm:$0xff]   ;;  %v2977_v22 = vld [vmem:[#allocation5 + $0x610] ss:$24 sps:$4 sm:$0xff]  }
 0x106   :  { %2109 = vmatprep.subr.bf16.mxu0 %v2892_v23  ;;  %2057 = vmatprep.mubr.bf16.mxu1 %v3224_v34  ;;  %v2982_v23 = vld [vmem:[#allocation5 + $0x644] ss:$24 sps:$4 sm:$0xff]  }
 0x107   :  { %2139 = vmatprep.mubr.bf16.mxu0 %v3209_v51  ;;  %v2908_v51 = vld [vmem:[#allocation5 + $0x3d0] ss:$24 sps:$4 sm:$0xff]  }
 0x108   :  { %2028 = vmatpush1.bf16.msra.mxu1 %v2887_v24  ;;  %v2980_v24 = vld [vmem:[#allocation5 + $0x640] ss:$24 sps:$4 sm:$0xff]  }
 0x109   :  { %2110 = vmatpush1.bf16.msra.mxu0 %v2890_v25  ;;  %2029 = vmatprep.subr.bf16.mxu1 %v2895_v26  ;;  %v2985_v25 = vld [vmem:[#allocation5 + $0x674] ss:$24 sps:$4 sm:$0xff]   ;;  %v2983_v26 = vld [vmem:[#allocation5 + $0x670] ss:$24 sps:$4 sm:$0xff]  }
 0x10a   :  { %2111 = vmatprep.subr.bf16.mxu0 %v2898_v27  ;;  %v2988_v27 = vld [vmem:[#allocation5 + $0x6a4] ss:$24 sps:$4 sm:$0xff]  }
 0x10c   :  { %2030 = vmatpush1.bf16.msra.mxu1 %v2893_v28  ;;  %v2986_v28 = vld [vmem:[#allocation5 + $0x6a0] ss:$24 sps:$4 sm:$0xff]  }
 0x10d   :  { %2112 = vmatpush1.bf16.msra.mxu0 %v2896_v29  ;;  %2031 = vmatprep.subr.bf16.mxu1 %v2901_v30  ;;  %v2991_v29 = vld [vmem:[#allocation5 + $0x6d4] ss:$24 sps:$4 sm:$0xff]   ;;  %v2989_v30 = vld [vmem:[#allocation5 + $0x6d0] ss:$24 sps:$4 sm:$0xff]  }
 0x10e   :  { %2113 = vmatprep.subr.bf16.mxu0 %v2904_v6  ;;  %v2994_v6 = vld [vmem:[#allocation5 + $0x704] ss:$24 sps:$4 sm:$0xff]  }
 0x110   :  { %2032 = vmatpush1.bf16.msra.mxu1 %v2899_v31  ;;  %v2997_v31 = vld [vmem:[#allocation5 + $0x734] ss:$24 sps:$4 sm:$0xff]  }
 0x111   :  { %2114 = vmatpush1.bf16.msra.mxu0 %v2902_v47  ;;  %2033 = vmatprep.subr.bf16.mxu1 %v2907_v32  ;;  %v2995_v32 = vld [vmem:[#allocation5 + $0x730] ss:$24 sps:$4 sm:$0xff]  }
 0x112   :  { %2115 = vmatprep.subr.bf16.mxu0 %v2910_v33 }
 0x114   :  { %2034 = vmatpush1.bf16.msra.mxu1 %v2905_v35  ;;  %v3000_v35 = vld [vmem:[#allocation5 + $0x764] ss:$24 sps:$4 sm:$0xff]  }
 0x115   :  { %2116 = vmatpush1.bf16.msra.mxu0 %v2908_v51  ;;  %2035 = vmatprep.subr.bf16.mxu1 %v2913_v36  ;;  %v2998_v36 = vld [vmem:[#allocation5 + $0x760] ss:$24 sps:$4 sm:$0xff]  }
 0x116   :  { %2117 = vmatprep.subr.bf16.mxu0 %v2916_v37  ;;  %v3003_v37 = vld [vmem:[#allocation5 + $0x794] ss:$24 sps:$4 sm:$0xff]  }
 0x118   :  { %2036 = vmatpush1.bf16.msra.mxu1 %v2911_v38  ;;  %v3001_v38 = vld [vmem:[#allocation5 + $0x790] ss:$24 sps:$4 sm:$0xff]  }
 0x119   :  { %2118 = vmatpush1.bf16.msra.mxu0 %v2914_v39  ;;  %2037 = vmatprep.subr.bf16.mxu1 %v2919_v40  ;;  %v3006_v39 = vld [vmem:[#allocation5 + $0x7c4] ss:$24 sps:$4 sm:$0xff]   ;;  %v3004_v40 = vld [vmem:[#allocation5 + $0x7c0] ss:$24 sps:$4 sm:$0xff]  }
 0x11a   :  { %2119 = vmatprep.subr.bf16.mxu0 %v2922_v41  ;;  %v3009_v41 = vld [vmem:[#allocation5 + $0x7f4] ss:$24 sps:$4 sm:$0xff]  }
 0x11c   :  { %2038 = vmatpush1.bf16.msra.mxu1 %v2917_v42  ;;  %v3007_v42 = vld [vmem:[#allocation5 + $0x7f0] ss:$24 sps:$4 sm:$0xff]  }
 0x11d   :  { %2120 = vmatpush1.bf16.msra.mxu0 %v2920_v43  ;;  %2039 = vmatprep.subr.bf16.mxu1 %v2925_v44  ;;  %v3012_v43 = vld [vmem:[#allocation5 + $0x824] ss:$24 sps:$4 sm:$0xff]   ;;  %v3010_v44 = vld [vmem:[#allocation5 + $0x820] ss:$24 sps:$4 sm:$0xff]  }
 0x11e   :  { %2121 = vmatprep.subr.bf16.mxu0 %v2928_v45  ;;  %v3015_v45 = vld [vmem:[#allocation5 + $0x854] ss:$24 sps:$4 sm:$0xff]  }
 0x120   :  { %2040 = vmatpush1.bf16.msra.mxu1 %v2923_v46  ;;  %v3013_v46 = vld [vmem:[#allocation5 + $0x850] ss:$24 sps:$4 sm:$0xff]  }
 0x121   :  { %2122 = vmatpush1.bf16.msra.mxu0 %v2926_v48  ;;  %2041 = vmatprep.subr.bf16.mxu1 %v2931_v49  ;;  %v3018_v48 = vld [vmem:[#allocation5 + $0x884] ss:$24 sps:$4 sm:$0xff]   ;;  %v3016_v49 = vld [vmem:[#allocation5 + $0x880] ss:$24 sps:$4 sm:$0xff]  }
 0x122   :  { %2123 = vmatprep.subr.bf16.mxu0 %v2934_v50  ;;  %v3021_v50 = vld [vmem:[#allocation5 + $0x8b4] ss:$24 sps:$4 sm:$0xff]  }
 0x124   :  { %2042 = vmatpush1.bf16.msra.mxu1 %v2929_v52  ;;  %v3019_v52 = vld [vmem:[#allocation5 + $0x8b0] ss:$24 sps:$4 sm:$0xff]  }
 0x125   :  { %2124 = vmatpush1.bf16.msra.mxu0 %v2932_v53  ;;  %2043 = vmatprep.subr.bf16.mxu1 %v2937_v54  ;;  %v3024_v53 = vld [vmem:[#allocation5 + $0x8e4] ss:$24 sps:$4 sm:$0xff]   ;;  %v3022_v54 = vld [vmem:[#allocation5 + $0x8e0] ss:$24 sps:$4 sm:$0xff]  }
 0x126   :  { %2125 = vmatprep.subr.bf16.mxu0 %v2940_v55  ;;  %v2197_v55 = vlaneseq }
 0x128   :  { %2044 = vmatpush1.bf16.msra.mxu1 %v2935_v56 }
 0x129   :  { %2126 = vmatpush1.bf16.msra.mxu0 %v2938_v57  ;;  %2045 = vmatprep.subr.bf16.mxu1 %v2943_v58 }
 0x12a   :  { %2127 = vmatprep.subr.bf16.mxu0 %v2946_v59 }
 0x12c   :  { %2046 = vmatpush1.bf16.msra.mxu1 %v2941_v60 }
 0x12d   :  { %2128 = vmatpush1.bf16.msra.mxu0 %v2944_v61  ;;  %2047 = vmatprep.subr.bf16.mxu1 %v2949_v62  ;;  %v2198_v61 = vshrl.u32 %v2197_v55, 7 }
 0x12e   :  { %2129 = vmatprep.subr.bf16.mxu0 %v2952_v63 }
 0x12f   :  { %v2199_v63 = vsub.s32 0, %v2198_v61 }
 0x130   :  { %2048 = vmatpush1.bf16.msra.mxu1 %v2947_v0  ;;  %v2195_v0 = vld [vmem:[#allocation7] sm:$0x3f] }
 0x131   :  { %2130 = vmatpush1.bf16.msra.mxu0 %v2950_v1  ;;  %2049 = vmatprep.subr.bf16.mxu1 %v2955_v2  ;;  %v2203_v1 = vsub.s32 1, %v2198_v61  ;;  %v2200_v2 = vrot.slane %v2195_v0, %v2199_v63 }
 0x132   :  { %2131 = vmatprep.subr.bf16.mxu0 %v2958_v3 }
 0x133   :  { %v2204_v3 = vrot.slane %v2195_v0, %v2203_v1 }
 0x134   :  { %2050 = vmatpush1.bf16.msra.mxu1 %v2953_v4 }
 0x135   :  { %2132 = vmatpush1.bf16.msra.mxu0 %v2956_v5  ;;  %2051 = vmatprep.subr.bf16.mxu1 %v2961_v8 }
 0x136   :  { %2133 = vmatprep.subr.bf16.mxu0 %v2964_v9 }
 0x138   :  { %2052 = vmatpush1.bf16.msra.mxu1 %v2959_v10 }
 0x139   :  { %2134 = vmatpush1.bf16.msra.mxu0 %v2962_v11  ;;  %2053 = vmatprep.subr.bf16.mxu1 %v2967_v12 }
 0x13a   :  { %2135 = vmatprep.subr.bf16.mxu0 %v2970_v13 }
 0x13c   :  { %2054 = vmatpush1.bf16.msra.mxu1 %v2965_v15  ;;  %v2207_v15 = vsub.s32 2, %v2198_v61 }
 0x13d   :  { %2136 = vmatpush1.bf16.msra.mxu0 %v2968_v16  ;;  %2055 = vmatprep.subr.bf16.mxu1 %v2973_v17  ;;  %v2211_v16 = vsub.s32 3, %v2198_v61 }
 0x13e   :  { %2137 = vmatprep.subr.bf16.mxu0 %v2976_v18  ;;  %v2208_v17 = vrot.slane %v2195_v0, %v2207_v15 }
 0x13f   :  { %v2212_v18 = vrot.slane %v2195_v0, %v2211_v16 }
 0x140   :  { %2056 = vmatpush1.bf16.msra.mxu1 %v2971_v19 }
 0x141   :  { %2138 = vmatpush1.bf16.msra.mxu0 %v2974_v20 }
 0x142   :  { %2148 = vmatprep.subr.bf16.mxu0 %v2979_v21 }
 0x143   :  { %2058 = vmatmul.mubr.bf16.vlgmr.msra.gmra.mrb[4].mxu1 %v3229_v14 }
 0x144   :  { %2140 = vmatmul.mubr.bf16.vlgmr.msra.gmra.mrb[4].mxu0 %v3215_v7  ;;  %v2992_v7 = vld [vmem:[#allocation5 + $0x700] ss:$24 sps:$4 sm:$0xff]  }
 0x145   :  { %2149 = vmatpush1.bf16.msra.mxu0 %v2977_v22  ;;  %2180 = vmatprep.mubr.bf16.mxu0 %v3224_v34 }
 0x146   :  { %2150 = vmatprep.subr.bf16.mxu0 %v2982_v23 }
 0x149   :  { %2151 = vmatpush1.bf16.msra.mxu0 %v2980_v24 }
 0x14a   :  { %2152 = vmatprep.subr.bf16.mxu0 %v2985_v25 }
 0x14d   :  { %2153 = vmatpush1.bf16.msra.mxu0 %v2983_v26 }
 0x14e   :  { %2154 = vmatprep.subr.bf16.mxu0 %v2988_v27 }
 0x151   :  { %2155 = vmatpush1.bf16.msra.mxu0 %v2986_v28 }
 0x152   :  { %2156 = vmatprep.subr.bf16.mxu0 %v2991_v29  ;;  %v2215_v29 = vsub.s32 4, %v2198_v61 }
 0x155   :  { %2157 = vmatpush1.bf16.msra.mxu0 %v2989_v30  ;;  %v2219_v30 = vsub.s32 5, %v2198_v61 }
 0x156   :  { %2158 = vmatprep.subr.bf16.mxu0 %v2994_v6  ;;  %v1854_v47 = vpop.f32.mrb[0].mxu1  ;;  %v2216_v6 = vrot.slane %v2195_v0, %v2215_v29 }
 0x157   :  { %v1856_v34 = vpop.f32.mrb[1].mxu1 }
 0x158   :  { %v1858_v33 = vpop.f32.mrb[2].mxu1 }
 0x159   :  { %2159 = vmatpush1.bf16.msra.mxu0 %v2992_v7  ;;  %v1859_v51 = vpop.f32.mrb[3].mxu1  ;;  %v2220_v7 = vrot.slane %v2195_v0, %v2219_v30 }
 0x15a   :  { %2160 = vmatprep.subr.bf16.mxu0 %v2997_v31  ;;  %v2240_v51 = vld [vmem:[%s3250_s1] sm:$0xff] }
 0x15d   :  { %2161 = vmatpush1.bf16.msra.mxu0 %v2995_v32 }
 0x15e   :  { %2162 = vmatprep.subr.bf16.mxu0 %v3000_v35 }
 0x161   :  { %2163 = vmatpush1.bf16.msra.mxu0 %v2998_v36  ;;  %v2242_v36 = vstv %s2241_s3 }
 0x162   :  { %2164 = vmatprep.subr.bf16.mxu0 %v3003_v37  ;;  %v2243_v37 = vmul.f32 %v2242_v36, %v2240_v51 }
 0x165   :  { %2165 = vmatpush1.bf16.msra.mxu0 %v3001_v38 }
 0x166   :  { %2166 = vmatprep.subr.bf16.mxu0 %v3006_v39  ;;  %v2246_v39 = vstv %s2557_s4 }
 0x169   :  { %2167 = vmatpush1.bf16.msra.mxu0 %v3004_v40 }
 0x16a   :  { %2168 = vmatprep.subr.bf16.mxu0 %v3009_v41 }
 0x16d   :  { %2169 = vmatpush1.bf16.msra.mxu0 %v3007_v42 }
 0x16e   :  { %2170 = vmatprep.subr.bf16.mxu0 %v3012_v43 }
 0x171   :  { %2171 = vmatpush1.bf16.msra.mxu0 %v3010_v44 }
 0x172   :  { %2172 = vmatprep.subr.bf16.mxu0 %v3015_v45 }
 0x175   :  { %2173 = vmatpush1.bf16.msra.mxu0 %v3013_v46 }
 0x176   :  { %2174 = vmatprep.subr.bf16.mxu0 %v3018_v48 }
 0x179   :  { %2175 = vmatpush1.bf16.msra.mxu0 %v3016_v49 }
 0x17a   :  { %2176 = vmatprep.subr.bf16.mxu0 %v3021_v50 }
 0x17d   :  { %2177 = vmatpush1.bf16.msra.mxu0 %v3019_v52 }
 0x17e   :  { %2178 = vmatprep.subr.bf16.mxu0 %v3024_v53 }
 0x181   :  { %2179 = vmatpush1.bf16.msra.mxu0 %v3022_v54 }
 0x184   :  { %2181 = vmatmul.mubr.bf16.vlgmr.msra.gmra.mrb[4].mxu0 %v3229_v14 }
 0x197   :  { %v1936_v56 = vpop.f32.mrb[0].mxu0 }
 0x198   :  { %v2559_v57 = vadd.f32 %v1936_v56, %v1854_v47  ;;  %v1938_v58 = vpop.f32.mrb[1].mxu0 }
 0x199   :  { %v2560_v59 = vadd.f32 %v1938_v58, %v1856_v34  ;;  %v1940_v60 = vpop.f32.mrb[2].mxu0 }
 0x19a   :  { %3025 = vtanh.f32 %v2559_v57  ;;  %v1941_v62 = vpop.f32.mrb[3].mxu0 }
 0x19b   :  { %3027 = vtanh.f32 %v2560_v59 }
 0x1a4   :  { %v3026_v4 = vpop.eup %3025 }
 0x1a5   :  { %v3028_v5 = vpop.eup %3027  ;;  %v2227_v8 = vmul.f32 %v3026_v4, %v2200_v2 }
 0x1a6   :  { %v2228_v9 = vmul.f32 %v3028_v5, %v2204_v3 }
 0x1a8   :  { %v2233_v14 = vadd.f32 %v2228_v9, %v2227_v8 }
 0x216   :  { %v2059_v10 = vpop.f32.mrb[4].mxu1 }
 0x217   :  { %3029 = vtanh.f32 %v2059_v10  ;;  %v2061_v11 = vpop.f32.mrb[5].mxu1 }
 0x218   :  { %3031 = vtanh.f32 %v2061_v11  ;;  %v2063_v12 = vpop.f32.mrb[6].mxu1 }
 0x219   :  { %v2064_v13 = vpop.f32.mrb[7].mxu1 }
 0x221   :  { %v3030_v19 = vpop.eup %3029 }
 0x222   :  { %v3032_v20 = vpop.eup %3031  ;;  %v2229_v21 = vmul.f32 %v3030_v19, %v2208_v17 }
 0x223   :  { %v2230_v22 = vmul.f32 %v3032_v20, %v2212_v18 }
 0x224   :  { %v2234_v23 = vadd.f32 %v2233_v14, %v2229_v21 }
 0x226   :  { %v2235_v24 = vadd.f32 %v2234_v23, %v2230_v22 }
 0x257   :  { %v2182_v25 = vpop.f32.mrb[4].mxu0 }
 0x258   :  { %3033 = vtanh.f32 %v2182_v25  ;;  %v2184_v26 = vpop.f32.mrb[5].mxu0 }
 0x259   :  { %3035 = vtanh.f32 %v2184_v26  ;;  %v2186_v27 = vpop.f32.mrb[6].mxu0 }
 0x25a   :  { %v2187_v28 = vpop.f32.mrb[7].mxu0 }
 0x262   :  { %v3034_v31 = vpop.eup %3033 }
 0x263   :  { %v3036_v47 = vpop.eup %3035  ;;  %v2231_v34 = vmul.f32 %v3034_v31, %v2216_v6 }
 0x264   :  { %v2232_v32 = vmul.f32 %v3036_v47, %v2220_v7 }
 0x265   :  { %v2236_v33 = vadd.f32 %v2235_v24, %v2231_v34 }
 0x267   :  { %v2237_v35 = vadd.f32 %v2236_v33, %v2232_v32 }
 0x269   :  { %2238 = vadd.xlane.f32.xlu0 %v2237_v35 }
 0x2f6   :  { %v2239_v38 = vpop.xlane.xlu0 %2238 }
 0x2f7   :  { %v2244_v40 = vadd.f32 %v2243_v37, %v2239_v38 }
 0x2f9   :  { %v2247_v41 = vadd.f32 %v2246_v39, %v2244_v40 }
 0x2fb   :  { %v2558_v42 = vmul.f32 -1.442695, %v2247_v41 }
 0x2fd   :  { %3037 = vpow2.f32 %v2558_v42 }
 0x307   :  { %v3038_v43 = vpop.eup %3037 }
 0x308   :  { %v2251_v44 = vadd.f32 1.0, %v3038_v43 }
 0x30a   :  { %3039 = vrcp.f32 %v2251_v44 }
 0x314   :  { %v3040_v45 = vpop.eup %3039 }
 0x315   :  { %2255 = vst.msk [vmem:[%s3254_s5] sm:$0xff] %vm2254_vm0, %v3040_v45 }
 0x316   :  { %2260 = vsyncpa [#allocation3], 1 }
 0x317   :  { %2261 = vsyncpa [#allocation6], 1 }
 0x318   :  { %2262 = vsyncpa [#allocation4], 1 }

</bundles_post_ra>
